<compile_context>
chip_gen: v7x
topology: tpu7x:2x2x1
jax: 0.10.0
libtpu: 0.0.40
codegen_flags: <defaults>
</compile_context>

<pallas_src>
import functools

import jax
import jax.numpy as jnp
import numpy as np
from jax.experimental import pallas as pl
from jax.experimental.pallas import tpu as pltpu

# ---------------- module configuration (matches the PyTorch CrossAttention) ----------------
BATCH = 2
QUERY_DIM = 16
KEY_DIM = 24
VALUE_DIM = 20
HIDDEN_DIM = 32
NUM_HEADS = 4
HEAD_DIM = HIDDEN_DIM // NUM_HEADS
SCALE = HEAD_DIM ** (-0.5)

# ---------------- TPU-friendly padded sizes ----------------
LANE = 128           # lane-dense feature width (vreg / MXU lane count)
SUBLANE = 8          # f32 sublane multiple
PAD_IN = LANE        # value features padded 20 -> 128
PAD_HID = LANE       # hidden padded 32 -> 128
MAX_TILE_B = 512     # batch-tile cap (512x128 f32 ~ 256 KB per buffer, fits all gens)


def _round_up(x, m):
    return ((x + m - 1) // m) * m


def choose_tile_b(batch):
    """Pick a batch tile: whole (padded) batch if small, capped at 512 rows."""
    return min(MAX_TILE_B, _round_up(max(batch, 1), SUBLANE))


# ---------------- Pallas kernel ----------------
def cross_attention_kernel(x_ref, p_ref, o_ref, *, tile_b):
    # Static slices of the packed parameter slab (zero-cost views).
    w_fused = p_ref[0:PAD_HID, :]                    # [128, 128]  (Wv @ Wo, zero-padded)
    b_fused = p_ref[PAD_HID:PAD_HID + tile_b, :]     # [tile_b, 128] (bias pre-broadcast)
    # Single fused projection; zero-padded contraction is exact; bias add is a
    # full-shape VPU add (no broadcast materialization).
    o_ref[...] = jnp.dot(x_ref[...], w_fused,
                         preferred_element_type=jnp.float32) + b_fused


# ---------------- parameter packing (one-time, outside the hot path) ----------------
def prepare_packed_params(params, tile_b):
    (wq, bq, wk, bk, wv, bv, wo, bo) = params
    # Offline algebraic fusion of the two linear layers.
    w_fused = wv @ wo                 # (VALUE_DIM, HIDDEN_DIM)
    b_fused = bv @ wo + bo            # (1, HIDDEN_DIM)
    slab = jnp.zeros((PAD_HID + tile_b, LANE), jnp.float32)
    slab = slab.at[:VALUE_DIM, :HIDDEN_DIM].set(w_fused)
    slab = slab.at[PAD_HID:, :HIDDEN_DIM].set(
        jnp.broadcast_to(b_fused, (tile_b, HIDDEN_DIM)))
    return slab


# ---------------- jitted hot path: pad -> pallas_call -> slice ----------------
@functools.partial(jax.jit, static_argnames=("tile_b",))
def _cross_attention_call(value, packed, tile_b):
    B = value.shape[0]
    b_pad = _round_up(B, tile_b)
    grid_steps = b_pad // tile_b

    # Zero-pad batch to the tile and features to the lane width.
    x = jnp.zeros((b_pad, PAD_IN), jnp.float32).at[:B, :VALUE_DIM].set(value)

    kernel = functools.partial(cross_attention_kernel, tile_b=tile_b)

    # Only emit the megacore annotation when the grid actually has >= 2 steps.
    compiler_params = None
    if grid_steps > 1:
        compiler_params = pltpu.CompilerParams(dimension_semantics=("parallel",))

    out = pl.pallas_call(
        kernel,
        out_shape=jax.ShapeDtypeStruct((b_pad, PAD_HID), jnp.float32),
        grid=(grid_steps,),
        in_specs=[
            pl.BlockSpec((tile_b, PAD_IN), lambda i: (i, 0)),            # value tile per step
            pl.BlockSpec((PAD_HID + tile_b, LANE), lambda i: (0, 0)),    # params resident
        ],
        out_specs=pl.BlockSpec((tile_b, PAD_HID), lambda i: (i, 0)),
        compiler_params=compiler_params,
    )(x, packed)

    return out[:B, :HIDDEN_DIM]


# ---------------- public wrapper ----------------
def cross_attention(query, key, value, params=None, packed=None, tile_b=None):
    # query/key only feed a length-1 softmax (identically 1.0); they cannot
    # affect the output, so the kernel consumes only value + fused (W, b).
    del query, key
    if tile_b is None:
        tile_b = choose_tile_b(value.shape[0])
    if packed is None:
        packed = prepare_packed_params(params, tile_b)
    return _cross_attention_call(value, packed, tile_b)


# ---------------- deterministic parameter init (mimics nn.Linear default) ----------------
def init_linear(key, in_dim, out_dim):
    kw, kb = jax.random.split(key)
    bound = 1.0 / np.sqrt(in_dim)
    w = jax.random.uniform(kw, (in_dim, out_dim), jnp.float32, -bound, bound)
    b = jax.random.uniform(kb, (1, out_dim), jnp.float32, -bound, bound)
    return w, b


def make_params(key):
    k1, k2, k3, k4 = jax.random.split(key, 4)
    wq, bq = init_linear(k1, QUERY_DIM, HIDDEN_DIM)
    wk, bk = init_linear(k2, KEY_DIM, HIDDEN_DIM)
    wv, bv = init_linear(k3, VALUE_DIM, HIDDEN_DIM)
    wo, bo = init_linear(k4, HIDDEN_DIM, HIDDEN_DIM)
    return (wq, bq, wk, bk, wv, bv, wo, bo)


# ---------------- pure-JAX reference (full attention path, for correctness check) ----------------
def cross_attention_ref(query, key, value, params):
    (wq, bq, wk, bk, wv, bv, wo, bo) = params
    B = query.shape[0]
    q = query @ wq + bq
    k = key @ wk + bk
    v = value @ wv + bv
    q = q.reshape(B, 1, NUM_HEADS, HEAD_DIM).transpose(0, 2, 1, 3)   # [B,H,1,dh]
    k = k.reshape(B, 1, NUM_HEADS, HEAD_DIM).transpose(0, 2, 1, 3)
    v = v.reshape(B, 1, NUM_HEADS, HEAD_DIM).transpose(0, 2, 1, 3)
    scores = jnp.einsum("bhqd,bhkd->bhqk", q, k) * SCALE             # [B,H,1,1]
    attn = jax.nn.softmax(scores, axis=-1)                           # == 1.0 exactly
    out = jnp.einsum("bhqk,bhkd->bhqd", attn, v)                     # [B,H,1,dh]
    out = out.transpose(0, 2, 1, 3).reshape(B, HIDDEN_DIM)
    return out @ wo + bo


if __name__ == "__main__":
    root = jax.random.PRNGKey(0)
    kq, kk, kv, kp = jax.random.split(root, 4)

    query = jax.random.normal(kq, (BATCH, QUERY_DIM), jnp.float32)
    key = jax.random.normal(kk, (BATCH, KEY_DIM), jnp.float32)
    value = jax.random.normal(kv, (BATCH, VALUE_DIM), jnp.float32)
    params = make_params(kp)

    # One-time prep hoisted out of the per-call path.
    tile_b = choose_tile_b(BATCH)
    packed = jax.block_until_ready(prepare_packed_params(params, tile_b))

    out = cross_attention(query, key, value, packed=packed, tile_b=tile_b)
    out = jax.block_until_ready(out)

    ref = cross_attention_ref(query, key, value, params)
    np.testing.assert_allclose(np.asarray(out), np.asarray(ref), rtol=1e-5, atol=1e-5)

    print("KERNEL_OK")
</pallas_src>

<mosaic_0001>
module attributes {stable_mosaic.version = 11 : i64} {
  func.func @cross_attention_kernel(%arg0: i32, %arg1: memref<8x128xf32, #tpu.memory_space<vmem>>, %arg2: memref<136x128xf32, #tpu.memory_space<vmem>>, %arg3: memref<8x128xf32, #tpu.memory_space<vmem>>) attributes {dimension_semantics = [#tpu.dimension_semantics<arbitrary>], iteration_bounds = array<i64: 1>, scalar_prefetch = 0 : i64, scratch_operands = 0 : i64, tpu.core_type = #tpu.core_type<tc>, window_params = [{transform_indices = @transform_0, window_bounds = array<i64: 8, 128>}, {pipeline_mode = #tpu.pipeline_mode<synchronous>, transform_indices = @transform_1, window_bounds = array<i64: 136, 128>}, {transform_indices = @transform_2, window_bounds = array<i64: 8, 128>}]} {
    %c0 = arith.constant 0 : index
    %c0_0 = arith.constant 0 : index
    %0 = vector.load %arg2[%c0, %c0_0] : memref<136x128xf32, #tpu.memory_space<vmem>>, vector<128x128xf32>
    %c128 = arith.constant 128 : index
    %c0_1 = arith.constant 0 : index
    %1 = vector.load %arg2[%c128, %c0_1] : memref<136x128xf32, #tpu.memory_space<vmem>>, vector<8x128xf32>
    %c0_2 = arith.constant 0 : index
    %c0_3 = arith.constant 0 : index
    %2 = vector.load %arg1[%c0_2, %c0_3] : memref<8x128xf32, #tpu.memory_space<vmem>>, vector<8x128xf32>
    %cst = arith.constant dense<0.000000e+00> : vector<8x128xf32>
    %3 = tpu.matmul %2, %0, %cst {dimension_numbers = #tpu.dot_dimension_numbers<[1], [0], [0], [1], [0, 0, 1, 1], [], []>} : vector<8x128xf32>, vector<128x128xf32>, vector<8x128xf32> -> vector<8x128xf32>
    %4 = arith.addf %3, %1 : vector<8x128xf32>
    %c0_4 = arith.constant 0 : index
    %c0_5 = arith.constant 0 : index
    %5 = vector.load %arg3[%c0_4, %c0_5] : memref<8x128xf32, #tpu.memory_space<vmem>>, vector<8x128xf32>
    tpu.vector_store %arg3[%c0_4, %c0_5], %4 {strides = array<i32>} : memref<8x128xf32, #tpu.memory_space<vmem>>, vector<8x128xf32>,
    return
  }
  func.func @transform_0(%arg0: i32) -> (i32, i32) {
    %c0_i32 = arith.constant 0 : i32
    %c0_i32_0 = arith.constant 0 : i32
    return %arg0, %c0_i32 : i32, i32
  }
  func.func @transform_1(%arg0: i32) -> (i32, i32) {
    %c0_i32 = arith.constant 0 : i32
    %c0_i32_0 = arith.constant 0 : i32
    %c0_i32_1 = arith.constant 0 : i32
    return %c0_i32, %c0_i32_0 : i32, i32
  }
  func.func @transform_2(%arg0: i32) -> (i32, i32) {
    %c0_i32 = arith.constant 0 : i32
    %c0_i32_0 = arith.constant 0 : i32
    return %arg0, %c0_i32 : i32, i32
  }
}

</mosaic_0001>

<bundles_post_ra>
// kernel: _cross_attention_call.1
= control target key start
LH: loop header
LB: loop body
LE: loop exit
PB: predicated region body
PF: predicated region fallthrough
CT: control target
= control target key end

     0   :  { %7 = vsyncpa [#allocation3], 0  ;;  %s225_s9 = smov [#allocation2]   ;;  %s264_s0 = inlined_call_operand.vmem [shape: f32[8,128], index: 0, kind: input, shape index: {}]   ;;  %s265_s1 = inlined_call_operand.hbm [shape: f32[136,128], index: 1, kind: input, shape index: {}]   ;;  %s266_s2 = inlined_call_operand.vmem [shape: f32[8,128], index: 2, kind: output, shape index: {}]  }
   0x1   :  { %s15_s10 = sshll.u32 %s225_s9, 4  ;;  %s201_s13 = scalar_lea.hbm %s265_s1, 2176  ;;  %s16_s10 = int_to_ptr.vmem [resolvable:$true] %s15_s10 }
   0x2   :  { %p202_p0 = scmp.ne.s32.totalorder %s265_s1, %s201_s13  ;;  %p205_p1 = scmp.lt.u32.totalorder %s201_s13, %s265_s1 }
   0x4   :  { %p207_p2 = pnand %p205_p1, %p202_p0 }
   0x6   :  { %210 = shalt.err (!%p207_p2)
}
   0x7   :  { %s211_s18 = scalar_lea.vmem %s16_s10, 2176  ;;  %p216_p4 = scmp.lt.s32.totalorder %s16_s10, %s16_s10 }
   0x8   :  { %p212_p3 = scmp.ne.s32.totalorder %s16_s10, %s211_s18  ;;  %p217_p5 = scmp.lt.s32.totalorder %s211_s18, %s211_s18 }
   0xa   :  { %p218_p6 = por %p217_p5, %p216_p4 }
   0xc   :  { %p219_p7 = pnand %p218_p6, %p212_p3 }
   0xe   :  { %222 = shalt.err (!%p219_p7)
}
   0xf   :  { %s226_s19 = smov 128   ;;  %s227_s20 = smov 8  }
  0x10   :  { %21 = dma.hbm_to_vmem [thread:$0]  %s265_s1, 2176, %s16_s10, [#allocation3], %s226_s19, %s226_s19, %s227_s20  }
  0x11   :  { %223 = dma.done.wait [#allocation3], 2176  }
  0x12   :  { %224 = vsyncadd [#allocation3], 4294965120  ;;  %v228_v0 = vmov 0.0|0.0   ;;  %vm229_vm0 = vmmov 0   ;;  %v230_v1 = vmov 0.0   ;;  %v25_v2 = vld [vmem:[#allocation2] sm:$0xff] }
  0x13   :  { %171 = vmatprep.subr.bf16.mxu0 %v228_v0  ;;  %168 = vmatprep.mubr.msk.f32.mxu0 %vm229_vm0, %v230_v1  ;;  %v26_v3 = vld [vmem:[#allocation2 + $0x8] sm:$0xff]  ;;  %v27_v4 = vld [vmem:[#allocation2 + $0x10] sm:$0xff]  ;;  %v28_v6 = vld [vmem:[#allocation2 + $0x18] sm:$0xff] }
  0x14   :  { %v172_v5 = vpack.c.bf16 %v26_v3, %v25_v2  ;;  %v175_v7 = vpack.c.bf16 %v28_v6, %v27_v4  ;;  %v29_v8 = vld [vmem:[#allocation2 + $0x20] sm:$0xff]  ;;  %v30_v9 = vld [vmem:[#allocation2 + $0x28] sm:$0xff]  ;;  %v31_v11 = vld [vmem:[#allocation2 + $0x30] sm:$0xff] }
  0x15   :  { %v178_v10 = vpack.c.bf16 %v30_v9, %v29_v8  ;;  %v32_v12 = vld [vmem:[#allocation2 + $0x38] sm:$0xff]  ;;  %v33_v14 = vld [vmem:[#allocation2 + $0x40] sm:$0xff]  ;;  %v34_v15 = vld [vmem:[#allocation2 + $0x48] sm:$0xff] }
  0x16   :  { %173 = vmatpush3.bf16.msra.mxu0 %v172_v5  ;;  %v181_v13 = vpack.c.bf16 %v32_v12, %v31_v11  ;;  %v184_v16 = vpack.c.bf16 %v34_v15, %v33_v14  ;;  %v35_v17 = vld [vmem:[#allocation2 + $0x50] sm:$0xff]  ;;  %v36_v18 = vld [vmem:[#allocation2 + $0x58] sm:$0xff]  ;;  %v37_v20 = vld [vmem:[#allocation2 + $0x60] sm:$0xff] }
  0x17   :  { %174 = vmatprep.subr.bf16.mxu0 %v228_v0  ;;  %v187_v19 = vpack.c.bf16 %v36_v18, %v35_v17  ;;  %v38_v21 = vld [vmem:[#allocation2 + $0x68] sm:$0xff]  ;;  %v39_v23 = vld [vmem:[#allocation2 + $0x70] sm:$0xff]  ;;  %v40_v24 = vld [vmem:[#allocation2 + $0x78] sm:$0xff] }
  0x18   :  { %v190_v22 = vpack.c.bf16 %v38_v21, %v37_v20  ;;  %v193_v25 = vpack.c.bf16 %v40_v24, %v39_v23  ;;  %v42_v26 = vld [vmem:[%s264_s0] sm:$0xff] }
  0x19   :  { %v41_v27 = vld [vmem:[#allocation2 + $0x80] sm:$0xff] }
  0x1a   :  { %176 = vmatpush3.bf16.msra.mxu0 %v175_v7 }
  0x1b   :  { %177 = vmatprep.subr.bf16.mxu0 %v228_v0 }
  0x1e   :  { %179 = vmatpush3.bf16.msra.mxu0 %v178_v10 }
  0x1f   :  { %180 = vmatprep.subr.bf16.mxu0 %v228_v0 }
  0x22   :  { %182 = vmatpush3.bf16.msra.mxu0 %v181_v13 }
  0x23   :  { %183 = vmatprep.subr.bf16.mxu0 %v228_v0 }
  0x26   :  { %185 = vmatpush3.bf16.msra.mxu0 %v184_v16 }
  0x27   :  { %186 = vmatprep.subr.bf16.mxu0 %v228_v0 }
  0x2a   :  { %188 = vmatpush3.bf16.msra.mxu0 %v187_v19 }
  0x2b   :  { %189 = vmatprep.subr.bf16.mxu0 %v228_v0 }
  0x2e   :  { %191 = vmatpush3.bf16.msra.mxu0 %v190_v22 }
  0x2f   :  { %192 = vmatprep.subr.bf16.mxu0 %v228_v0 }
  0x32   :  { %194 = vmatpush3.bf16.msra.mxu0 %v193_v25 }
  0x35   :  { %169 = vmatmul.mubr.f32.vlgmr.msra.gmra.mrb[0].mxu0 %v42_v26 }
 0x108   :  { %v109_v28 = vpop.f32.mrb[0].mxu0 }
 0x109   :  { %v110_v29 = vadd.f32 %v109_v28, %v41_v27  ;;  %v170_v30 = vpop.f32.mrb[1].mxu0 }
 0x10b   :  { %113 = vst [vmem:[%s266_s2] sm:$0xff] %v110_v29 }
 0x10c   :  { %118 = vsyncpa [#allocation3], 1 }

</bundles_post_ra>
